<compile_context>
chip_gen: v6e
topology: v6e:2x2x1
jax: 0.10.0
libtpu: 0.0.40
codegen_flags: <defaults>
</compile_context>

<pallas_src>
import jax
import jax.numpy as jnp
from jax.experimental import pallas as pl
from jax.experimental.pallas import tpu as pltpu

INPUT_DIM = 2
HIDDEN_DIM = 128
OUT_DIM = 768


def _round_up(x, m):
    return (x + m - 1) // m * m


def _mlp_kernel(x_ref, w1_ref, b1_ref, w2_ref, b2_ref, o_ref):
    x = x_ref[...]                      # (rt, INPUT_DIM) f32
    w1 = w1_ref[...]                    # (INPUT_DIM, HIDDEN_DIM) f32

    # First linear: K=2 is far below MXU depth, so do it as an unrolled
    # broadcast-FMA on the VPU instead of a padded MXU pass.
    h = b1_ref[...]                     # (1, HIDDEN_DIM), broadcasts to (rt, H)
    for k in range(INPUT_DIM):          # static unroll (INPUT_DIM == 2)
        h = h + x[:, k:k + 1] * w1[k:k + 1, :]
    h = jnp.maximum(h, 0.0)             # ReLU

    # Second linear on the MXU with f32 accumulate.
    y = jnp.dot(h, w2_ref[...], preferred_element_type=jnp.float32)
    y = y + b2_ref[...]                 # (1, OUT_DIM) broadcasts
    o_ref[...] = y.astype(o_ref.dtype)


def trajectory_encoder(x, w1, b1, w2, b2, *, row_tile=1024, out_dtype=None):
    """x: [N, INPUT_DIM]. Returns [N, OUT_DIM] in `out_dtype` (default x.dtype).

    row_tile = rows per grid step; large tiles keep the (mem-bound) output
    writeback near the HBM roofline.  It is shrunk automatically for small N,
    and ragged N is handled by zero-padding rows and slicing the result.
    """
    n, d = x.shape
    assert d == INPUT_DIM
    out_dtype = x.dtype if out_dtype is None else out_dtype

    # Sublane-aligned row tile; shrink for small inputs, keep >= 8.
    rt = _round_up(min(int(row_tile), _round_up(max(n, 8), 8)), 8)
    n_pad = _round_up(max(n, 8), rt)
    if n_pad != n:
        x = jnp.pad(x, ((0, n_pad - n), (0, 0)))

    grid = (n_pad // rt,)

    # Scoped-VMEM budget: double-buffered x/out tiles + live h/y + resident
    # weights, with 2x headroom; floored at the 16 MiB default and capped
    # below v7x's 64 MiB-per-core physical VMEM.
    f32b = 4
    est = (2 * rt * INPUT_DIM * f32b
           + 2 * rt * OUT_DIM * jnp.dtype(out_dtype).itemsize
           + rt * (HIDDEN_DIM + OUT_DIM) * f32b
           + (INPUT_DIM * HIDDEN_DIM + HIDDEN_DIM
              + HIDDEN_DIM * OUT_DIM + OUT_DIM) * f32b)
    vmem_limit = int(min(48 << 20, max(16 << 20, 2 * est)))

    out = pl.pallas_call(
        _mlp_kernel,
        out_shape=jax.ShapeDtypeStruct((n_pad, OUT_DIM), out_dtype),
        grid=grid,
        in_specs=[
            # x: tile over rows; feature dim (2) kept whole (== full array dim).
            pl.BlockSpec((rt, INPUT_DIM), lambda i: (i, 0)),
            # weights / biases: whole arrays, resident across grid steps.
            pl.BlockSpec((INPUT_DIM, HIDDEN_DIM), lambda i: (0, 0)),
            pl.BlockSpec((1, HIDDEN_DIM), lambda i: (0, 0)),
            pl.BlockSpec((HIDDEN_DIM, OUT_DIM), lambda i: (0, 0)),
            pl.BlockSpec((1, OUT_DIM), lambda i: (0, 0)),
        ],
        # Keep OUT_DIM untiled: 768 = 6*128 -> unmasked lane-dense vst.
        out_specs=pl.BlockSpec((rt, OUT_DIM), lambda i: (i, 0)),
        compiler_params=pltpu.CompilerParams(
            dimension_semantics=("parallel",),
            vmem_limit_bytes=vmem_limit,
        ),
    )(x, w1, b1, w2, b2)

    return out[:n] if n_pad != n else out


def init_params(key):
    """Deterministic synthetic params matching the PyTorch module's shapes."""
    k1, k2, k3, k4 = jax.random.split(key, 4)
    # nn.Linear stores weight [out, in] in torch; we keep the transposed
    # [in, out] layout used directly by x @ W.
    w1 = jax.random.normal(k1, (INPUT_DIM, HIDDEN_DIM), jnp.float32) * (1.0 / jnp.sqrt(INPUT_DIM))
    b1 = jax.random.normal(k2, (1, HIDDEN_DIM), jnp.float32) * 0.01
    w2 = jax.random.normal(k3, (HIDDEN_DIM, OUT_DIM), jnp.float32) * (1.0 / jnp.sqrt(HIDDEN_DIM))
    b2 = jax.random.normal(k4, (1, OUT_DIM), jnp.float32) * 0.01
    return w1, b1, w2, b2


def reference(x, w1, b1, w2, b2):
    h = jnp.maximum(x @ w1 + b1, 0.0)
    return h @ w2 + b2


if __name__ == "__main__":
    key = jax.random.PRNGKey(0)
    kx, kp = jax.random.split(key)

    # Small trajectory batch: batch=8, seq=8 points, each point is (x, y).
    batch, seq = 8, 8
    x = jax.random.normal(kx, (batch, seq, INPUT_DIM), jnp.float32)
    x_flat = x.reshape(batch * seq, INPUT_DIM)  # glue reshape in plain JAX

    w1, b1, w2, b2 = init_params(kp)

    out_flat = trajectory_encoder(x_flat, w1, b1, w2, b2)
    out = out_flat.reshape(batch, seq, OUT_DIM)
    jax.block_until_ready(out)

    ref = reference(x_flat, w1, b1, w2, b2).reshape(batch, seq, OUT_DIM)
    assert out.shape == (batch, seq, OUT_DIM)
    assert jnp.allclose(out, ref, atol=1e-4, rtol=1e-4), "mismatch vs reference"

    print("KERNEL_OK")
</pallas_src>

<mosaic_0001>
module attributes {stable_mosaic.version = 11 : i64} {
  func.func @_mlp_kernel(%arg0: i32, %arg1: memref<64x2xf32, #tpu.memory_space<vmem>>, %arg2: memref<2x128xf32, #tpu.memory_space<vmem>>, %arg3: memref<1x128xf32, #tpu.memory_space<vmem>>, %arg4: memref<128x768xf32, #tpu.memory_space<vmem>>, %arg5: memref<1x768xf32, #tpu.memory_space<vmem>>, %arg6: memref<64x768xf32, #tpu.memory_space<vmem>>) attributes {dimension_semantics = [#tpu.dimension_semantics<parallel>], iteration_bounds = array<i64: 1>, scalar_prefetch = 0 : i64, scratch_operands = 0 : i64, tpu.core_type = #tpu.core_type<tc>, window_params = [{transform_indices = @transform_0, window_bounds = array<i64: 64, 2>}, {pipeline_mode = #tpu.pipeline_mode<synchronous>, transform_indices = @transform_1, window_bounds = array<i64: 2, 128>}, {pipeline_mode = #tpu.pipeline_mode<synchronous>, transform_indices = @transform_2, window_bounds = array<i64: 1, 128>}, {pipeline_mode = #tpu.pipeline_mode<synchronous>, transform_indices = @transform_3, window_bounds = array<i64: 128, 768>}, {pipeline_mode = #tpu.pipeline_mode<synchronous>, transform_indices = @transform_4, window_bounds = array<i64: 1, 768>}, {transform_indices = @transform_5, window_bounds = array<i64: 64, 768>}]} {
    %c0 = arith.constant 0 : index
    %c0_0 = arith.constant 0 : index
    %0 = vector.load %arg1[%c0, %c0_0] : memref<64x2xf32, #tpu.memory_space<vmem>>, vector<64x2xf32>
    %c0_1 = arith.constant 0 : index
    %c0_2 = arith.constant 0 : index
    %1 = vector.load %arg2[%c0_1, %c0_2] : memref<2x128xf32, #tpu.memory_space<vmem>>, vector<2x128xf32>
    %c0_3 = arith.constant 0 : index
    %c0_4 = arith.constant 0 : index
    %2 = vector.load %arg3[%c0_3, %c0_4] : memref<1x128xf32, #tpu.memory_space<vmem>>, vector<1x128xf32>
    %3 = vector.extract_strided_slice %0 {offsets = [0, 0], sizes = [64, 1], strides = [1, 1]} : vector<64x2xf32> to vector<64x1xf32>
    %4 = vector.extract_strided_slice %1 {offsets = [0, 0], sizes = [1, 128], strides = [1, 1]} : vector<2x128xf32> to vector<1x128xf32>
    %5 = vector.broadcast %3 : vector<64x1xf32> to vector<64x128xf32>
    %6 = vector.broadcast %4 : vector<1x128xf32> to vector<64x128xf32>
    %7 = arith.mulf %5, %6 : vector<64x128xf32>
    %8 = vector.broadcast %2 : vector<1x128xf32> to vector<64x128xf32>
    %9 = arith.addf %8, %7 : vector<64x128xf32>
    %10 = vector.extract_strided_slice %0 {offsets = [0, 1], sizes = [64, 1], strides = [1, 1]} : vector<64x2xf32> to vector<64x1xf32>
    %11 = vector.extract_strided_slice %1 {offsets = [1, 0], sizes = [1, 128], strides = [1, 1]} : vector<2x128xf32> to vector<1x128xf32>
    %12 = vector.broadcast %10 : vector<64x1xf32> to vector<64x128xf32>
    %13 = vector.broadcast %11 : vector<1x128xf32> to vector<64x128xf32>
    %14 = arith.mulf %12, %13 : vector<64x128xf32>
    %15 = arith.addf %9, %14 : vector<64x128xf32>
    %cst = arith.constant 0.000000e+00 : f32
    %16 = vector.broadcast %cst : f32 to vector<64x128xf32>
    %17 = arith.maximumf %15, %16 : vector<64x128xf32>
    %c0_5 = arith.constant 0 : index
    %c0_6 = arith.constant 0 : index
    %18 = vector.load %arg4[%c0_5, %c0_6] : memref<128x768xf32, #tpu.memory_space<vmem>>, vector<128x768xf32>
    %cst_7 = arith.constant dense<0.000000e+00> : vector<64x768xf32>
    %19 = tpu.matmul %17, %18, %cst_7 {dimension_numbers = #tpu.dot_dimension_numbers<[1], [0], [0], [1], [0, 0, 1, 1], [], []>} : vector<64x128xf32>, vector<128x768xf32>, vector<64x768xf32> -> vector<64x768xf32>
    %c0_8 = arith.constant 0 : index
    %c0_9 = arith.constant 0 : index
    %20 = vector.load %arg5[%c0_8, %c0_9] : memref<1x768xf32, #tpu.memory_space<vmem>>, vector<1x768xf32>
    %21 = vector.broadcast %20 : vector<1x768xf32> to vector<64x768xf32>
    %22 = arith.addf %19, %21 : vector<64x768xf32>
    %c0_10 = arith.constant 0 : index
    %c0_11 = arith.constant 0 : index
    %23 = vector.load %arg6[%c0_10, %c0_11] : memref<64x768xf32, #tpu.memory_space<vmem>>, vector<64x768xf32>
    tpu.vector_store %arg6[%c0_10, %c0_11], %22 {strides = array<i32>} : memref<64x768xf32, #tpu.memory_space<vmem>>, vector<64x768xf32>,
    return
  }
  func.func @transform_0(%arg0: i32) -> (i32, i32) {
    %c0_i32 = arith.constant 0 : i32
    %c0_i32_0 = arith.constant 0 : i32
    return %arg0, %c0_i32 : i32, i32
  }
  func.func @transform_1(%arg0: i32) -> (i32, i32) {
    %c0_i32 = arith.constant 0 : i32
    %c0_i32_0 = arith.constant 0 : i32
    %c0_i32_1 = arith.constant 0 : i32
    return %c0_i32, %c0_i32_0 : i32, i32
  }
  func.func @transform_2(%arg0: i32) -> (i32, i32) {
    %c0_i32 = arith.constant 0 : i32
    %c0_i32_0 = arith.constant 0 : i32
    %c0_i32_1 = arith.constant 0 : i32
    return %c0_i32, %c0_i32_0 : i32, i32
  }
  func.func @transform_3(%arg0: i32) -> (i32, i32) {
    %c0_i32 = arith.constant 0 : i32
    %c0_i32_0 = arith.constant 0 : i32
    %c0_i32_1 = arith.constant 0 : i32
    return %c0_i32, %c0_i32_0 : i32, i32
  }
  func.func @transform_4(%arg0: i32) -> (i32, i32) {
    %c0_i32 = arith.constant 0 : i32
    %c0_i32_0 = arith.constant 0 : i32
    %c0_i32_1 = arith.constant 0 : i32
    return %c0_i32, %c0_i32_0 : i32, i32
  }
  func.func @transform_5(%arg0: i32) -> (i32, i32) {
    %c0_i32 = arith.constant 0 : i32
    %c0_i32_0 = arith.constant 0 : i32
    return %arg0, %c0_i32 : i32, i32
  }
}

</mosaic_0001>

<bundles_post_ra>
// kernel: tpu_custom_call.1
= control target key start
LH: loop header
LB: loop body
LE: loop exit
PB: predicated region body
PF: predicated region fallthrough
CT: control target
= control target key end

     0   :  { %10 = vsyncpa [#allocation3], 0  ;;  %s1022_s0 = inlined_call_operand.vmem [shape: f32[64,2], index: 0, kind: input, shape index: {}]   ;;  %s1023_s1 = inlined_call_operand.vmem [shape: f32[2,128], index: 1, kind: input, shape index: {}]   ;;  %s1024_s2 = inlined_call_operand.vmem [shape: f32[1,128], index: 2, kind: input, shape index: {}]   ;;  %s1025_s3 = inlined_call_operand.hbm [shape: f32[128,768], index: 3, kind: input, shape index: {}]   ;;  %s1026_s4 = inlined_call_operand.vmem [shape: f32[1,768], index: 4, kind: input, shape index: {}]   ;;  %s1027_s5 = inlined_call_operand.hbm [shape: f32[64,768], index: 5, kind: output, shape index: {}]  }
   0x1   :  { %11 = vsyncpa [#allocation4], 0  ;;  %s792_s18 = smov [#allocation2]  }
   0x2   :  { %s23_s19 = sshll.u32 %s792_s18, 4  ;;  %s24_s19 = int_to_ptr.vmem [resolvable:$true] %s23_s19 }
   0x3   :  { %s756_s20 = scalar_lea.vmem %s24_s19, 12288  ;;  %p761_p1 = scmp.lt.s32.totalorder %s24_s19, %s24_s19 }
   0x4   :  { %p757_p0 = scmp.ne.s32.totalorder %s24_s19, %s756_s20  ;;  %p762_p2 = scmp.lt.s32.totalorder %s756_s20, %s756_s20 }
   0x6   :  { %p763_p3 = por %p762_p2, %p761_p1 }
   0x8   :  { %p764_p4 = pnand %p763_p3, %p757_p0 }
   0xa   :  { %767 = shalt.err (!%p764_p4)
}
   0xb   :  { %s793_s21 = smov 768   ;;  %s794_s22 = smov 48  }
   0xc   :  { %29 = dma.hbm_to_vmem [thread:$0]  %s1025_s3, 12288, %s24_s19, [#allocation3], %s793_s21, %s793_s21, %s794_s22  }
   0xd   :  { %788 = dma.done.wait [#allocation3], 12288  }
   0xe   :  { %789 = vsyncadd [#allocation3], 4294955008  ;;  %v795_v0 = vmov 0   ;;  %v36_v1 = vld [vmem:[%s1022_s0 + $0x8] sm:$0xff]  ;;  %v35_v2 = vld [vmem:[%s1022_s0] sm:$0xff]  ;;  %v796_v8 = vmov 1  }
   0xf   :  { %745 = vset.pattern.permute.xlu1 %v795_v0  ;;  %743 = vset.pattern.permute.xlu0 %v795_v0  ;;  %v262_v3 = vld [vmem:[#allocation2 + $0x2d8] sm:$0xff]  ;;  %v264_v4 = vld [vmem:[#allocation2 + $0x2e8] sm:$0xff]  ;;  %v261_v5 = vld [vmem:[#allocation2 + $0x2d0] sm:$0xff] }
  0x10   :  { %52 = vperm.xlu1 %745, %v36_v1   ;;  %47 = vperm.xlu0 %743, %v35_v2   ;;  %v263_v6 = vld [vmem:[#allocation2 + $0x2e0] sm:$0xff]  ;;  %v256_v7 = vld [vmem:[#allocation2 + $0x2a8] sm:$0xff]  ;;  %v258_v9 = vld [vmem:[#allocation2 + $0x2b8] sm:$0xff] }
  0x11   :  { %299 = vmatprep.subr.mxu0 %v262_v3  ;;  %412 = vmatprep.subr.mxu1 %v264_v4  ;;  %v255_v10 = vld [vmem:[#allocation2 + $0x2a0] sm:$0xff]  ;;  %v257_v11 = vld [vmem:[#allocation2 + $0x2b0] sm:$0xff]  ;;  %v250_v12 = vld [vmem:[#allocation2 + $0x278] sm:$0xff] }
  0x12   :  { %300 = vmatpush1.msra.mxu0 %v261_v5  ;;  %v37_v13 = vld [vmem:[%s1022_s0 + $0x10] sm:$0xff]  ;;  %413 = vmatpush1.msra.mxu1 %v263_v6  ;;  %v252_v14 = vld [vmem:[#allocation2 + $0x288] sm:$0xff]  ;;  %v251_v16 = vld [vmem:[#allocation2 + $0x280] sm:$0xff] }
  0x13   :  { %301 = vmatprep.subr.mxu0 %v256_v7  ;;  %414 = vmatprep.subr.mxu1 %v258_v9  ;;  %v249_v15 = vld [vmem:[#allocation2 + $0x270] sm:$0xff]  ;;  %v244_v17 = vld [vmem:[#allocation2 + $0x248] sm:$0xff]  ;;  %v246_v18 = vld [vmem:[#allocation2 + $0x258] sm:$0xff] }
  0x14   :  { %746 = vset.pattern.permute.xlu1 %v796_v8  ;;  %744 = vset.pattern.permute.xlu0 %v796_v8  ;;  %v38_v19 = vld [vmem:[%s1022_s0 + $0x18] sm:$0xff]  ;;  %v243_v20 = vld [vmem:[#allocation2 + $0x240] sm:$0xff]  ;;  %v245_v21 = vld [vmem:[#allocation2 + $0x250] sm:$0xff] }
  0x15   :  { %116 = vperm.xlu1 %746, %v36_v1   ;;  %112 = vperm.xlu0 %744, %v35_v2   ;;  %v238_v22 = vld [vmem:[#allocation2 + $0x218] sm:$0xff]  ;;  %v240_v23 = vld [vmem:[#allocation2 + $0x228] sm:$0xff]  ;;  %v237_v24 = vld [vmem:[#allocation2 + $0x210] sm:$0xff] }
  0x16   :  { %302 = vmatpush1.msra.mxu0 %v255_v10  ;;  %415 = vmatpush1.msra.mxu1 %v257_v11  ;;  %v239_v25 = vld [vmem:[#allocation2 + $0x220] sm:$0xff]  ;;  %v232_v27 = vld [vmem:[#allocation2 + $0x1e8] sm:$0xff]  ;;  %v234_v28 = vld [vmem:[#allocation2 + $0x1f8] sm:$0xff]  ;;  %v797_v11 = vmov 0.0  }
  0x17   :  { %303 = vmatprep.subr.mxu0 %v250_v12  ;;  %416 = vmatprep.subr.mxu1 %v252_v14  ;;  %v39_v26 = vld [vmem:[%s1022_s0 + $0x20] sm:$0xff]  ;;  %v233_v30 = vld [vmem:[#allocation2 + $0x1f0] sm:$0xff]  ;;  %v226_v31 = vld [vmem:[#allocation2 + $0x1b8] sm:$0xff]  ;;  %v85_v12 = vlaneseq }
  0x18   :  { %304 = vmatpush1.msra.mxu0 %v249_v15  ;;  %417 = vmatpush1.msra.mxu1 %v251_v16  ;;  %v231_v29 = vld [vmem:[#allocation2 + $0x1e0] sm:$0xff]  ;;  %v228_v32 = vld [vmem:[#allocation2 + $0x1c8] sm:$0xff]  ;;  %v225_v34 = vld [vmem:[#allocation2 + $0x1b0] sm:$0xff] }
  0x19   :  { %747 = vset.pattern.permute.xlu1 %v795_v0  ;;  %120 = vperm.xlu0 %744, %v37_v13   ;;  %v40_v33 = vld [vmem:[%s1022_s0 + $0x28] sm:$0xff]  ;;  %v227_v35 = vld [vmem:[#allocation2 + $0x1c0] sm:$0xff]  ;;  %v222_v37 = vld [vmem:[#allocation2 + $0x198] sm:$0xff] }
  0x1a   :  { %57 = vperm.xlu1 %747, %v37_v13   ;;  %305 = vmatprep.subr.mxu0 %v244_v17  ;;  %v220_v36 = vld [vmem:[#allocation2 + $0x188] sm:$0xff]  ;;  %v219_v38 = vld [vmem:[#allocation2 + $0x180] sm:$0xff]  ;;  %v221_v39 = vld [vmem:[#allocation2 + $0x190] sm:$0xff]  ;;  %v861_v13 = vshrl.u32 %v85_v12, 7 }
  0x1b   :  { %418 = vmatprep.subr.mxu1 %v246_v18  ;;  %306 = vmatpush1.msra.mxu0 %v243_v20  ;;  %v41_v40 = vld [vmem:[%s1022_s0 + $0x30] sm:$0xff]  ;;  %v214_v41 = vld [vmem:[#allocation2 + $0x158] sm:$0xff]  ;;  %v216_v42 = vld [vmem:[#allocation2 + $0x168] sm:$0xff] }
  0x1c   :  { %419 = vmatpush1.msra.mxu1 %v245_v21  ;;  %307 = vmatprep.subr.mxu0 %v238_v22  ;;  %v213_v43 = vld [vmem:[#allocation2 + $0x150] sm:$0xff]  ;;  %v215_v44 = vld [vmem:[#allocation2 + $0x160] sm:$0xff]  ;;  %v208_v45 = vld [vmem:[#allocation2 + $0x128] sm:$0xff]  ;;  %v87_v14 = vsub.s32 0, %v861_v13  ;;  %v145_v17 = vsub.s32 1, %v861_v13 }
  0x1d   :  { %124 = vperm.xlu0 %744, %v38_v19   ;;  %420 = vmatprep.subr.mxu1 %v240_v23  ;;  %v210_v46 = vld [vmem:[#allocation2 + $0x138] sm:$0xff]  ;;  %v207_v48 = vld [vmem:[#allocation2 + $0x120] sm:$0xff]  ;;  %v209_v49 = vld [vmem:[#allocation2 + $0x130] sm:$0xff] }
  0x1e   :  { %62 = vperm.xlu1 %747, %v38_v19   ;;  %308 = vmatpush1.msra.mxu0 %v237_v24  ;;  %v42_v47 = vld [vmem:[%s1022_s0 + $0x38] sm:$0xff]  ;;  %v204_v51 = vld [vmem:[#allocation2 + $0x108] sm:$0xff]  ;;  %v201_v52 = vld [vmem:[#allocation2 + $0xf0] sm:$0xff] }
  0x1f   :  { %421 = vmatpush1.msra.mxu1 %v239_v25  ;;  %309 = vmatprep.subr.mxu0 %v232_v27  ;;  %v202_v50 = vld [vmem:[#allocation2 + $0xf8] sm:$0xff]  ;;  %v203_v53 = vld [vmem:[#allocation2 + $0x100] sm:$0xff]  ;;  %v196_v54 = vld [vmem:[#allocation2 + $0xc8] sm:$0xff] }
  0x20   :  { %422 = vmatprep.subr.mxu1 %v234_v28  ;;  %310 = vmatpush1.msra.mxu0 %v231_v29  ;;  %v198_v55 = vld [vmem:[#allocation2 + $0xd8] sm:$0xff]  ;;  %v195_v56 = vld [vmem:[#allocation2 + $0xc0] sm:$0xff]  ;;  %v197_v57 = vld [vmem:[#allocation2 + $0xd0] sm:$0xff] }
  0x21   :  { %128 = vperm.xlu0 %744, %v39_v26   ;;  %423 = vmatpush1.msra.mxu1 %v233_v30  ;;  %v190_v58 = vld [vmem:[#allocation2 + $0x98] sm:$0xff]  ;;  %v192_v59 = vld [vmem:[#allocation2 + $0xa8] sm:$0xff]  ;;  %v189_v60 = vld [vmem:[#allocation2 + $0x90] sm:$0xff] }
  0x22   :  { %67 = vperm.xlu1 %747, %v39_v26   ;;  %311 = vmatprep.subr.mxu0 %v226_v31  ;;  %v191_v61 = vld [vmem:[#allocation2 + $0xa0] sm:$0xff]  ;;  %v184_v62 = vld [vmem:[#allocation2 + $0x68] sm:$0xff]  ;;  %v186_v63 = vld [vmem:[#allocation2 + $0x78] sm:$0xff] }
  0x23   :  { %424 = vmatprep.subr.mxu1 %v228_v32  ;;  %312 = vmatpush1.msra.mxu0 %v225_v34  ;;  %v183_v0 = vld [vmem:[#allocation2 + $0x60] sm:$0xff]  ;;  %v185_v1 = vld [vmem:[#allocation2 + $0x70] sm:$0xff]  ;;  %v178_v2 = vld [vmem:[#allocation2 + $0x38] sm:$0xff] }
  0x24   :  { %425 = vmatpush1.msra.mxu1 %v227_v35  ;;  %313 = vmatprep.subr.mxu0 %v220_v36  ;;  %v180_v3 = vld [vmem:[#allocation2 + $0x48] sm:$0xff]  ;;  %v177_v4 = vld [vmem:[#allocation2 + $0x30] sm:$0xff]  ;;  %v179_v5 = vld [vmem:[#allocation2 + $0x40] sm:$0xff] }
  0x25   :  { %132 = vperm.xlu0 %744, %v40_v33   ;;  %426 = vmatprep.subr.mxu1 %v222_v37  ;;  %v172_v6 = vld [vmem:[#allocation2 + $0x8] sm:$0xff]  ;;  %v174_v7 = vld [vmem:[#allocation2 + $0x18] sm:$0xff]  ;;  %v171_v8 = vld [vmem:[#allocation2] sm:$0xff] }
  0x26   :  { %72 = vperm.xlu1 %747, %v40_v33   ;;  %314 = vmatpush1.msra.mxu0 %v219_v38  ;;  %v173_v9 = vld [vmem:[#allocation2 + $0x10] sm:$0xff]  ;;  %v266_v10 = vld [vmem:[#allocation2 + $0x2f8] sm:$0xff]  ;;  %v43_v15 = vld [vmem:[%s1023_s1] sm:$0x3] }
  0x27   :  { %427 = vmatpush1.msra.mxu1 %v221_v39  ;;  %315 = vmatprep.subr.mxu0 %v214_v41  ;;  %v869_v16 = vrot.slane %v43_v15, %v87_v14  ;;  %v875_v21 = vrot.slane %v43_v15, %v145_v17  ;;  %v880_v22 = vld [vmem:[%s1024_s2] ss:$0 sm:$0xff]  ;;  %v265_v33 = vld [vmem:[#allocation2 + $0x2f0] sm:$0xff]  ;;  %v260_v36 = vld [vmem:[#allocation2 + $0x2c8] sm:$0xff] }
  0x28   :  { %428 = vmatprep.subr.mxu1 %v216_v42  ;;  %316 = vmatpush1.msra.mxu0 %v213_v43  ;;  %v259_v38 = vld [vmem:[#allocation2 + $0x2c0] sm:$0xff]  ;;  %v254_v42 = vld [vmem:[#allocation2 + $0x298] sm:$0xff] }
  0x29   :  { %136 = vperm.xlu0 %744, %v41_v40   ;;  %429 = vmatpush1.msra.mxu1 %v215_v44  ;;  %v218_v15 = vld [vmem:[#allocation2 + $0x178] sm:$0xff] }
  0x2a   :  { %77 = vperm.xlu1 %747, %v41_v40   ;;  %317 = vmatprep.subr.mxu0 %v208_v45  ;;  %v253_v45 = vld [vmem:[#allocation2 + $0x290] sm:$0xff] }
  0x2b   :  { %430 = vmatprep.subr.mxu1 %v210_v46  ;;  %318 = vmatpush1.msra.mxu0 %v207_v48  ;;  %v248_v48 = vld [vmem:[#allocation2 + $0x268] sm:$0xff] }
  0x2c   :  { %431 = vmatpush1.msra.mxu1 %v209_v49  ;;  %319 = vmatprep.subr.mxu0 %v202_v50 }
  0x2d   :  { %140 = vperm.xlu0 %744, %v42_v47   ;;  %432 = vmatprep.subr.mxu1 %v204_v51  ;;  %v247_v51 = vld [vmem:[#allocation2 + $0x260] sm:$0xff] }
  0x2e   :  { %82 = vperm.xlu1 %747, %v42_v47   ;;  %320 = vmatpush1.msra.mxu0 %v201_v52 }
  0x2f   :  { %433 = vmatpush1.msra.mxu1 %v203_v53  ;;  %321 = vmatprep.subr.mxu0 %v196_v54  ;;  %v242_v54 = vld [vmem:[#allocation2 + $0x238] sm:$0xff] }
  0x30   :  { %434 = vmatprep.subr.mxu1 %v198_v55  ;;  %322 = vmatpush1.msra.mxu0 %v195_v56  ;;  %v241_v56 = vld [vmem:[#allocation2 + $0x230] sm:$0xff] }
  0x31   :  { %435 = vmatpush1.msra.mxu1 %v197_v57  ;;  %323 = vmatprep.subr.mxu0 %v190_v58 }
  0x32   :  { %436 = vmatprep.subr.mxu1 %v192_v59  ;;  %324 = vmatpush1.msra.mxu0 %v189_v60  ;;  %v236_v59 = vld [vmem:[#allocation2 + $0x208] sm:$0xff] }
  0x33   :  { %437 = vmatpush1.msra.mxu1 %v191_v61  ;;  %325 = vmatprep.subr.mxu0 %v184_v62  ;;  %v235_v62 = vld [vmem:[#allocation2 + $0x200] sm:$0xff] }
  0x34   :  { %438 = vmatprep.subr.mxu1 %v186_v63  ;;  %326 = vmatpush1.msra.mxu0 %v183_v0 }
  0x35   :  { %439 = vmatpush1.msra.mxu1 %v185_v1  ;;  %327 = vmatprep.subr.mxu0 %v178_v2  ;;  %v230_v1 = vld [vmem:[#allocation2 + $0x1d8] sm:$0xff] }
  0x36   :  { %440 = vmatprep.subr.mxu1 %v180_v3  ;;  %328 = vmatpush1.msra.mxu0 %v177_v4  ;;  %v229_v3 = vld [vmem:[#allocation2 + $0x1d0] sm:$0xff] }
  0x37   :  { %441 = vmatpush1.msra.mxu1 %v179_v5  ;;  %329 = vmatprep.subr.mxu0 %v172_v6  ;;  %v224_v6 = vld [vmem:[#allocation2 + $0x1a8] sm:$0xff] }
  0x38   :  { %442 = vmatprep.subr.mxu1 %v174_v7  ;;  %330 = vmatpush1.msra.mxu0 %v171_v8 }
  0x39   :  { %443 = vmatpush1.msra.mxu1 %v173_v9  ;;  %363 = vmatprep.mubr.f32.mxu0 %v797_v11  ;;  %v223_v9 = vld [vmem:[#allocation2 + $0x1a0] sm:$0xff] }
  0x3a   :  { %476 = vmatprep.mubr.f32.mxu1 %v797_v11  ;;  %525 = vmatprep.subr.mxu0 %v266_v10 }
  0x3b   :  { %704 = vmatprep.subr.mxu1 %v266_v10 }
  0x8b   :  { %v48_v18 = vpop.permute.xlu0 %47  ;;  %v53_v19 = vpop.permute.xlu1 %52 }
  0x8c   :  { %v89_v20 = vmul.f32 %v869_v16, %v48_v18  ;;  %v90_v26 = vmul.f32 %v869_v16, %v53_v19  ;;  %v217_v19 = vld [vmem:[#allocation2 + $0x170] sm:$0xff] }
  0x8e   :  { %v103_v25 = vadd.f32 %v880_v22, %v89_v20  ;;  %v104_v30 = vadd.f32 %v880_v22, %v90_v26 }
  0x90   :  { %v117_v23 = vpop.permute.xlu1 %116  ;;  %v113_v24 = vpop.permute.xlu0 %112 }
  0x91   :  { %v147_v27 = vmul.f32 %v875_v21, %v113_v24  ;;  %v148_v28 = vmul.f32 %v875_v21, %v117_v23  ;;  %v212_v24 = vld [vmem:[#allocation2 + $0x148] sm:$0xff] }
  0x93   :  { %v155_v29 = vadd.f32 %v147_v27, %v103_v25  ;;  %v156_v37 = vadd.f32 %v148_v28, %v104_v30  ;;  %v211_v27 = vld [vmem:[#allocation2 + $0x140] sm:$0xff]  ;;  %v206_v30 = vld [vmem:[#allocation2 + $0x118] sm:$0xff] }
  0x94   :  { %v121_v34 = vpop.permute.xlu0 %120 }
  0x95   :  { %v887_v31 = vmax.f32 %v155_v29, 0.0  ;;  %v58_v32 = vpop.permute.xlu1 %57  ;;  %v149_v40 = vmul.f32 %v875_v21, %v121_v34  ;;  %v895_v44 = vmax.f32 %v156_v37, 0.0 }
  0x96   :  { %v91_v35 = vmul.f32 %v869_v16, %v58_v32 }
  0x97   :  { %364 = vmatmul.mubr.f32.vlgmr.msra.gmra.mxu0 %v887_v31  ;;  %477 = vmatmul.mubr.f32.vlgmr.msra.gmra.mxu1 %v887_v31 }
  0x98   :  { %v105_v39 = vadd.f32 %v880_v22, %v91_v35  ;;  %526 = vmatpush1.msra.mxu0 %v265_v33  ;;  %720 = vmatpush1.msra.mxu1 %v265_v33  ;;  %v125_v47 = vpop.permute.xlu0 %124  ;;  %v205_v33 = vld [vmem:[#allocation2 + $0x110] sm:$0xff] }
  0x99   :  { %527 = vmatprep.subr.mxu0 %v260_v36  ;;  %705 = vmatprep.subr.mxu1 %v260_v36  ;;  %v63_v41 = vpop.permute.xlu1 %62  ;;  %v150_v52 = vmul.f32 %v875_v21, %v125_v47  ;;  %v200_v36 = vld [vmem:[#allocation2 + $0xe8] sm:$0xff] }
  0x9a   :  { %v92_v43 = vmul.f32 %v869_v16, %v63_v41  ;;  %528 = vmatpush1.msra.mxu0 %v259_v38  ;;  %721 = vmatpush1.msra.mxu1 %v259_v38  ;;  %v157_v46 = vadd.f32 %v149_v40, %v105_v39  ;;  %v194_v39 = vld [vmem:[#allocation2 + $0xb8] sm:$0xff]  ;;  %v176_v47 = vld [vmem:[#allocation2 + $0x28] sm:$0xff] }
  0x9b   :  { %369 = vmatprep.mubr.f32.mxu0 %v797_v11  ;;  %482 = vmatprep.mubr.f32.mxu1 %v797_v11 }
  0x9c   :  { %529 = vmatprep.subr.mxu0 %v254_v42  ;;  %706 = vmatprep.subr.mxu1 %v254_v42  ;;  %v106_v49 = vadd.f32 %v880_v22, %v92_v43  ;;  %v904_v55 = vmax.f32 %v157_v46, 0.0  ;;  %v129_v58 = vpop.permute.xlu0 %128  ;;  %v188_v42 = vld [vmem:[#allocation2 + $0x88] sm:$0xff]  ;;  %v187_v43 = vld [vmem:[#allocation2 + $0x80] sm:$0xff]  ;;  %v181_v46 = vld [vmem:[#allocation2 + $0x50] sm:$0xff] }
  0x9d   :  { %370 = vmatmul.mubr.f32.gmra.mxu0 %v895_v44  ;;  %483 = vmatmul.mubr.f32.gmra.mxu1 %v895_v44  ;;  %v68_v50 = vpop.permute.xlu1 %67  ;;  %v151_v63 = vmul.f32 %v875_v21, %v129_v58 }
  0x9e   :  { %530 = vmatpush1.msra.mxu0 %v253_v45  ;;  %722 = vmatpush1.msra.mxu1 %v253_v45  ;;  %v93_v53 = vmul.f32 %v869_v16, %v68_v50  ;;  %v158_v57 = vadd.f32 %v150_v52, %v106_v49  ;;  %v283_v49 = vsub.s32 3, %v861_v13 }
  0x9f   :  { %531 = vmatprep.subr.mxu0 %v248_v48  ;;  %707 = vmatprep.subr.mxu1 %v248_v48  ;;  %v175_v48 = vld [vmem:[#allocation2 + $0x20] sm:$0xff] }
  0xa0   :  { %532 = vmatpush1.msra.mxu0 %v247_v51  ;;  %723 = vmatpush1.msra.mxu1 %v247_v51  ;;  %v107_v61 = vadd.f32 %v880_v22, %v93_v53  ;;  %v913_v2 = vmax.f32 %v158_v57, 0.0  ;;  %v133_v5 = vpop.permute.xlu0 %132 }
  0xa1   :  { %375 = vmatprep.mubr.f32.mxu0 %v797_v11  ;;  %488 = vmatprep.mubr.f32.mxu1 %v797_v11  ;;  %v73_v60 = vpop.permute.xlu1 %72  ;;  %v152_v10 = vmul.f32 %v875_v21, %v133_v5 }
  0xa2   :  { %533 = vmatprep.subr.mxu0 %v242_v54  ;;  %708 = vmatprep.subr.mxu1 %v242_v54  ;;  %v94_v0 = vmul.f32 %v869_v16, %v73_v60  ;;  %v159_v4 = vadd.f32 %v151_v63, %v107_v61 }
  0xa3   :  { %376 = vmatmul.mubr.f32.gmra.mxu0 %v904_v55  ;;  %489 = vmatmul.mubr.f32.gmra.mxu1 %v904_v55 }
  0xa4   :  { %534 = vmatpush1.msra.mxu0 %v241_v56  ;;  %724 = vmatpush1.msra.mxu1 %v241_v56  ;;  %v108_v8 = vadd.f32 %v880_v22, %v94_v0  ;;  %v922_v18 = vmax.f32 %v159_v4, 0.0  ;;  %v137_v23 = vpop.permute.xlu0 %136 }
  0xa5   :  { %535 = vmatprep.subr.mxu0 %v236_v59  ;;  %709 = vmatprep.subr.mxu1 %v236_v59  ;;  %v78_v7 = vpop.permute.xlu1 %77  ;;  %v153_v28 = vmul.f32 %v875_v21, %v137_v23 }
  0xa6   :  { %536 = vmatpush1.msra.mxu0 %v235_v62  ;;  %725 = vmatpush1.msra.mxu1 %v235_v62  ;;  %v95_v12 = vmul.f32 %v869_v16, %v78_v7  ;;  %v160_v20 = vadd.f32 %v152_v10, %v108_v8 }
  0xa7   :  { %381 = vmatprep.mubr.f32.mxu0 %v797_v11  ;;  %494 = vmatprep.mubr.f32.mxu1 %v797_v11 }
  0xa8   :  { %537 = vmatprep.subr.mxu0 %v230_v1  ;;  %710 = vmatprep.subr.mxu1 %v230_v1  ;;  %v109_v26 = vadd.f32 %v880_v22, %v95_v12  ;;  %v931_v32 = vmax.f32 %v160_v20, 0.0  ;;  %v141_v35 = vpop.permute.xlu0 %140 }
  0xa9   :  { %382 = vmatmul.mubr.f32.gmra.mxu0 %v913_v2  ;;  %495 = vmatmul.mubr.f32.gmra.mxu1 %v913_v2  ;;  %v83_v25 = vpop.permute.xlu1 %82  ;;  %v154_v38 = vmul.f32 %v875_v21, %v141_v35  ;;  %v182_v21 = vld [vmem:[#allocation2 + $0x58] sm:$0xff] }
  0xaa   :  { %538 = vmatpush1.msra.mxu0 %v229_v3  ;;  %726 = vmatpush1.msra.mxu1 %v229_v3  ;;  %v96_v29 = vmul.f32 %v869_v16, %v83_v25  ;;  %v161_v34 = vadd.f32 %v153_v28, %v109_v26  ;;  %v199_v16 = vld [vmem:[#allocation2 + $0xe0] sm:$0xff] }
  0xab   :  { %539 = vmatprep.subr.mxu0 %v224_v6  ;;  %711 = vmatprep.subr.mxu1 %v224_v6 }
  0xac   :  { %540 = vmatpush1.msra.mxu0 %v223_v9  ;;  %727 = vmatpush1.msra.mxu1 %v223_v9  ;;  %v110_v37 = vadd.f32 %v880_v22, %v96_v29  ;;  %v169_v40 = vmax.f32 %v161_v34, 0.0  ;;  %v193_v22 = vld [vmem:[#allocation2 + $0xb0] sm:$0xff] }
  0xad   :  { %387 = vmatprep.mubr.f32.mxu0 %v797_v11  ;;  %500 = vmatprep.mubr.f32.mxu1 %v797_v11 }
  0xae   :  { %541 = vmatprep.subr.mxu0 %v218_v15  ;;  %712 = vmatprep.subr.mxu1 %v218_v15  ;;  %v162_v41 = vadd.f32 %v154_v38, %v110_v37 }
  0xaf   :  { %388 = vmatmul.mubr.f32.gmra.mxu0 %v922_v18  ;;  %501 = vmatmul.mubr.f32.gmra.mxu1 %v922_v18 }
  0xb0   :  { %542 = vmatpush1.msra.mxu0 %v217_v19  ;;  %728 = vmatpush1.msra.mxu1 %v217_v19  ;;  %v170_v45 = vmax.f32 %v162_v41, 0.0 }
  0xb1   :  { %543 = vmatprep.subr.mxu0 %v212_v24  ;;  %713 = vmatprep.subr.mxu1 %v212_v24 }
  0xb2   :  { %544 = vmatpush1.msra.mxu0 %v211_v27  ;;  %729 = vmatpush1.msra.mxu1 %v211_v27 }
  0xb3   :  { %393 = vmatprep.mubr.f32.mxu0 %v797_v11  ;;  %506 = vmatprep.mubr.f32.mxu1 %v797_v11 }
  0xb4   :  { %545 = vmatprep.subr.mxu0 %v206_v30  ;;  %714 = vmatprep.subr.mxu1 %v206_v30 }
  0xb5   :  { %394 = vmatmul.mubr.f32.gmra.mxu0 %v931_v32  ;;  %507 = vmatmul.mubr.f32.gmra.mxu1 %v931_v32 }
  0xb6   :  { %546 = vmatpush1.msra.mxu0 %v205_v33  ;;  %730 = vmatpush1.msra.mxu1 %v205_v33 }
  0xb7   :  { %547 = vmatprep.subr.mxu0 %v200_v36  ;;  %715 = vmatprep.subr.mxu1 %v200_v36 }
  0xb8   :  { %548 = vmatpush1.msra.mxu0 %v199_v16  ;;  %731 = vmatpush1.msra.mxu1 %v199_v16 }
  0xb9   :  { %399 = vmatprep.mubr.f32.mxu0 %v797_v11  ;;  %512 = vmatprep.mubr.f32.mxu1 %v797_v11 }
  0xba   :  { %549 = vmatprep.subr.mxu0 %v194_v39  ;;  %716 = vmatprep.subr.mxu1 %v194_v39 }
  0xbb   :  { %400 = vmatmul.mubr.f32.gmra.mxu0 %v169_v40  ;;  %513 = vmatmul.mubr.f32.gmra.mxu1 %v169_v40 }
  0xbc   :  { %550 = vmatpush1.msra.mxu0 %v193_v22  ;;  %732 = vmatpush1.msra.mxu1 %v193_v22 }
  0xbd   :  { %551 = vmatprep.subr.mxu0 %v188_v42  ;;  %717 = vmatprep.subr.mxu1 %v188_v42 }
  0xbe   :  { %552 = vmatpush1.msra.mxu0 %v187_v43  ;;  %733 = vmatpush1.msra.mxu1 %v187_v43 }
  0xbf   :  { %405 = vmatprep.mubr.f32.mxu0 %v797_v11  ;;  %518 = vmatprep.mubr.f32.mxu1 %v797_v11 }
  0xc0   :  { %553 = vmatprep.subr.mxu0 %v182_v21  ;;  %718 = vmatprep.subr.mxu1 %v182_v21 }
  0xc1   :  { %406 = vmatmul.mubr.f32.gmra.mxu0 %v170_v45  ;;  %519 = vmatmul.mubr.f32.gmra.mxu1 %v170_v45 }
  0xc2   :  { %554 = vmatpush1.msra.mxu0 %v181_v46  ;;  %734 = vmatpush1.msra.mxu1 %v181_v46 }
  0xc3   :  { %555 = vmatprep.subr.mxu0 %v176_v47  ;;  %719 = vmatprep.subr.mxu1 %v176_v47 }
  0xc4   :  { %556 = vmatpush1.msra.mxu0 %v175_v48  ;;  %735 = vmatpush1.msra.mxu1 %v175_v48 }
  0xc5   :  { %589 = vmatprep.mubr.f32.mxu0 %v797_v11  ;;  %613 = vmatprep.mubr.f32.mxu1 %v797_v11 }
  0xc6   :  { %590 = vmatmul.mubr.f32.vlgmr.msra.gmra.mxu0 %v887_v31  ;;  %614 = vmatmul.mubr.f32.vlgmr.msra.gmra.mxu1 %v922_v18  ;;  %v279_v31 = vsub.s32 2, %v861_v13 }
  0xc7   :  { %595 = vmatprep.mubr.f32.mxu0 %v797_v11  ;;  %619 = vmatprep.mubr.f32.mxu1 %v797_v11 }
  0xca   :  { %596 = vmatmul.mubr.f32.gmra.mxu0 %v895_v44  ;;  %620 = vmatmul.mubr.f32.gmra.mxu1 %v931_v32  ;;  %v961_v44 = vld [vmem:[%s1026_s4] sm:$0x3f]  ;;  %s798_s4 = smov [#allocation5]  }
  0xcb   :  { %601 = vmatprep.mubr.f32.mxu0 %v797_v11  ;;  %625 = vmatprep.mubr.f32.mxu1 %v797_v11  ;;  %v967_v50 = vrot.slane %v961_v44, %v87_v14  ;;  %v970_v51 = vrot.slane %v961_v44, %v279_v31  ;;  %v978_v52 = vrot.slane %v961_v44, %v283_v49  ;;  %v287_v31 = vsub.s32 4, %v861_v13  ;;  %s691_s18 = sshll.u32 %s798_s4, 4  ;;  %s692_s18 = int_to_ptr.vmem [resolvable:$true] %s691_s18 }
  0xcc   :  { %s768_s19 = scalar_lea.vmem %s692_s18, 6144  ;;  %p773_p6 = scmp.lt.s32.totalorder %s692_s18, %s692_s18 }
  0xcd   :  { %p769_p5 = scmp.ne.s32.totalorder %s692_s18, %s768_s19  ;;  %p774_p7 = scmp.lt.s32.totalorder %s768_s19, %s768_s19 }
  0xce   :  { %602 = vmatmul.mubr.f32.gmra.mxu0 %v904_v55  ;;  %626 = vmatmul.mubr.f32.gmra.mxu1 %v169_v40 }
  0xcf   :  { %607 = vmatprep.mubr.f32.mxu0 %v797_v11  ;;  %631 = vmatprep.mubr.f32.mxu1 %v797_v11  ;;  %v975_v11 = vrot.slane %v961_v44, %v145_v17  ;;  %p775_p8 = por %p774_p7, %p773_p6 }
  0xd1   :  { %p776_p9 = pnand %p775_p8, %p769_p5 }
  0xd2   :  { %608 = vmatmul.mubr.f32.gmra.mxu0 %v913_v2  ;;  %632 = vmatmul.mubr.f32.gmra.mxu1 %v170_v45 }
 0x157   :  { %v365_v53 = vpop.f32.mrf.mxu0  ;;  %v478_v54 = vpop.f32.mrf.mxu1 }
 0x158   :  { %v366_v55 = vadd.f32 %v365_v53, %v967_v50  ;;  %v479_v56 = vadd.f32 %v478_v54, %v970_v51  ;;  %v291_v54 = vsub.s32 5, %v861_v13 }
 0x159   :  { %v367_v57 = vpop.f32.mrf.mxu0  ;;  %v480_v14 = vpop.f32.mrf.mxu1 }
 0x15a   :  { %638 = vst [vmem:[#allocation5] sm:$0xff] %v366_v55  ;;  %640 = vst [vmem:[#allocation5 + $0x10] sm:$0xff] %v479_v56  ;;  %v368_v58 = vadd.f32 %v367_v57, %v975_v11  ;;  %v481_v59 = vadd.f32 %v480_v14, %v978_v52 }
 0x15c   :  { %639 = vst [vmem:[#allocation5 + $0x8] sm:$0xff] %v368_v58  ;;  %641 = vst [vmem:[#allocation5 + $0x18] sm:$0xff] %v481_v59  ;;  %v288_v58 = vrot.slane %v961_v44, %v287_v31 }
 0x15d   :  { %v371_v17 = vpop.f32.mrf.mxu0  ;;  %v484_v60 = vpop.f32.mrf.mxu1 }
 0x15e   :  { %v372_v61 = vadd.f32 %v371_v17, %v967_v50  ;;  %v485_v62 = vadd.f32 %v484_v60, %v970_v51  ;;  %v292_v60 = vrot.slane %v961_v44, %v291_v54 }
 0x15f   :  { %v373_v63 = vpop.f32.mrf.mxu0  ;;  %v486_v0 = vpop.f32.mrf.mxu1 }
 0x160   :  { %644 = vst [vmem:[#allocation5 + $0x30] sm:$0xff] %v372_v61  ;;  %646 = vst [vmem:[#allocation5 + $0x40] sm:$0xff] %v485_v62  ;;  %v374_v1 = vadd.f32 %v373_v63, %v975_v11  ;;  %v487_v2 = vadd.f32 %v486_v0, %v978_v52 }
 0x162   :  { %645 = vst [vmem:[#allocation5 + $0x38] sm:$0xff] %v374_v1  ;;  %647 = vst [vmem:[#allocation5 + $0x48] sm:$0xff] %v487_v2 }
 0x163   :  { %v377_v3 = vpop.f32.mrf.mxu0  ;;  %v490_v4 = vpop.f32.mrf.mxu1 }
 0x164   :  { %v378_v5 = vadd.f32 %v377_v3, %v967_v50  ;;  %v491_v6 = vadd.f32 %v490_v4, %v970_v51 }
 0x165   :  { %v379_v7 = vpop.f32.mrf.mxu0  ;;  %v492_v8 = vpop.f32.mrf.mxu1 }
 0x166   :  { %650 = vst [vmem:[#allocation5 + $0x60] sm:$0xff] %v378_v5  ;;  %652 = vst [vmem:[#allocation5 + $0x70] sm:$0xff] %v491_v6  ;;  %v380_v9 = vadd.f32 %v379_v7, %v975_v11  ;;  %v493_v10 = vadd.f32 %v492_v8, %v978_v52 }
 0x168   :  { %651 = vst [vmem:[#allocation5 + $0x68] sm:$0xff] %v380_v9  ;;  %653 = vst [vmem:[#allocation5 + $0x78] sm:$0xff] %v493_v10 }
 0x169   :  { %v383_v12 = vpop.f32.mrf.mxu0  ;;  %v496_v15 = vpop.f32.mrf.mxu1 }
 0x16a   :  { %v384_v18 = vadd.f32 %v383_v12, %v967_v50  ;;  %v497_v19 = vadd.f32 %v496_v15, %v970_v51 }
 0x16b   :  { %v385_v20 = vpop.f32.mrf.mxu0  ;;  %v498_v23 = vpop.f32.mrf.mxu1 }
 0x16c   :  { %656 = vst [vmem:[#allocation5 + $0x90] sm:$0xff] %v384_v18  ;;  %658 = vst [vmem:[#allocation5 + $0xa0] sm:$0xff] %v497_v19  ;;  %v386_v24 = vadd.f32 %v385_v20, %v975_v11  ;;  %v499_v25 = vadd.f32 %v498_v23, %v978_v52 }
 0x16e   :  { %657 = vst [vmem:[#allocation5 + $0x98] sm:$0xff] %v386_v24  ;;  %659 = vst [vmem:[#allocation5 + $0xa8] sm:$0xff] %v499_v25 }
 0x16f   :  { %v389_v26 = vpop.f32.mrf.mxu0  ;;  %v502_v27 = vpop.f32.mrf.mxu1 }
 0x170   :  { %v390_v28 = vadd.f32 %v389_v26, %v967_v50  ;;  %v503_v29 = vadd.f32 %v502_v27, %v970_v51 }
 0x171   :  { %v391_v30 = vpop.f32.mrf.mxu0  ;;  %v504_v32 = vpop.f32.mrf.mxu1 }
 0x172   :  { %662 = vst [vmem:[#allocation5 + $0xc0] sm:$0xff] %v390_v28  ;;  %664 = vst [vmem:[#allocation5 + $0xd0] sm:$0xff] %v503_v29  ;;  %v392_v33 = vadd.f32 %v391_v30, %v975_v11  ;;  %v505_v34 = vadd.f32 %v504_v32, %v978_v52 }
 0x174   :  { %663 = vst [vmem:[#allocation5 + $0xc8] sm:$0xff] %v392_v33  ;;  %665 = vst [vmem:[#allocation5 + $0xd8] sm:$0xff] %v505_v34 }
 0x175   :  { %v395_v35 = vpop.f32.mrf.mxu0  ;;  %v508_v36 = vpop.f32.mrf.mxu1 }
 0x176   :  { %v396_v37 = vadd.f32 %v395_v35, %v967_v50  ;;  %v509_v16 = vadd.f32 %v508_v36, %v970_v51 }
 0x177   :  { %v397_v38 = vpop.f32.mrf.mxu0  ;;  %v510_v39 = vpop.f32.mrf.mxu1 }
 0x178   :  { %668 = vst [vmem:[#allocation5 + $0xf0] sm:$0xff] %v396_v37  ;;  %670 = vst [vmem:[#allocation5 + $0x100] sm:$0xff] %v509_v16  ;;  %v398_v40 = vadd.f32 %v397_v38, %v975_v11  ;;  %v511_v22 = vadd.f32 %v510_v39, %v978_v52 }
 0x17a   :  { %669 = vst [vmem:[#allocation5 + $0xf8] sm:$0xff] %v398_v40  ;;  %671 = vst [vmem:[#allocation5 + $0x108] sm:$0xff] %v511_v22 }
 0x17b   :  { %v401_v41 = vpop.f32.mrf.mxu0  ;;  %v514_v42 = vpop.f32.mrf.mxu1 }
 0x17c   :  { %v402_v43 = vadd.f32 %v401_v41, %v967_v50  ;;  %v515_v21 = vadd.f32 %v514_v42, %v970_v51 }
 0x17d   :  { %v403_v45 = vpop.f32.mrf.mxu0  ;;  %v516_v46 = vpop.f32.mrf.mxu1 }
 0x17e   :  { %674 = vst [vmem:[#allocation5 + $0x120] sm:$0xff] %v402_v43  ;;  %676 = vst [vmem:[#allocation5 + $0x130] sm:$0xff] %v515_v21  ;;  %v404_v47 = vadd.f32 %v403_v45, %v975_v11  ;;  %v517_v48 = vadd.f32 %v516_v46, %v978_v52 }
 0x180   :  { %675 = vst [vmem:[#allocation5 + $0x128] sm:$0xff] %v404_v47  ;;  %677 = vst [vmem:[#allocation5 + $0x138] sm:$0xff] %v517_v48 }
 0x181   :  { %v407_v49 = vpop.f32.mrf.mxu0  ;;  %v520_v53 = vpop.f32.mrf.mxu1 }
 0x182   :  { %v408_v55 = vadd.f32 %v407_v49, %v967_v50  ;;  %v521_v56 = vadd.f32 %v520_v53, %v970_v51 }
 0x183   :  { %v409_v57 = vpop.f32.mrf.mxu0  ;;  %v522_v14 = vpop.f32.mrf.mxu1 }
 0x184   :  { %680 = vst [vmem:[#allocation5 + $0x150] sm:$0xff] %v408_v55  ;;  %682 = vst [vmem:[#allocation5 + $0x160] sm:$0xff] %v521_v56  ;;  %v410_v59 = vadd.f32 %v409_v57, %v975_v11  ;;  %v523_v17 = vadd.f32 %v522_v14, %v978_v52 }
 0x186   :  { %681 = vst [vmem:[#allocation5 + $0x158] sm:$0xff] %v410_v59  ;;  %683 = vst [vmem:[#allocation5 + $0x168] sm:$0xff] %v523_v17  ;;  %v591_v61 = vpop.f32.mrf.mxu0  ;;  %v615_v13 = vpop.f32.mrf.mxu1 }
 0x187   :  { %v592_v62 = vadd.f32 %v591_v61, %v288_v58  ;;  %v616_v50 = vadd.f32 %v615_v13, %v288_v58 }
 0x188   :  { %v593_v63 = vpop.f32.mrf.mxu0  ;;  %v617_v51 = vpop.f32.mrf.mxu1 }
 0x189   :  { %642 = vst [vmem:[#allocation5 + $0x20] sm:$0xff] %v592_v62  ;;  %666 = vst [vmem:[#allocation5 + $0xe0] sm:$0xff] %v616_v50  ;;  %v594_v0 = vadd.f32 %v593_v63, %v292_v60  ;;  %v618_v1 = vadd.f32 %v617_v51, %v292_v60 }
 0x18a   :  { %v597_v2 = vpop.f32.mrf.mxu0  ;;  %v621_v3 = vpop.f32.mrf.mxu1 }
 0x18b   :  { %643 = vst [vmem:[#allocation5 + $0x28] sm:$0xff] %v594_v0  ;;  %667 = vst [vmem:[#allocation5 + $0xe8] sm:$0xff] %v618_v1  ;;  %v598_v11 = vadd.f32 %v597_v2, %v288_v58  ;;  %v622_v52 = vadd.f32 %v621_v3, %v288_v58 }
 0x18c   :  { %v599_v4 = vpop.f32.mrf.mxu0  ;;  %v623_v44 = vpop.f32.mrf.mxu1 }
 0x18d   :  { %648 = vst [vmem:[#allocation5 + $0x50] sm:$0xff] %v598_v11  ;;  %672 = vst [vmem:[#allocation5 + $0x110] sm:$0xff] %v622_v52  ;;  %v600_v5 = vadd.f32 %v599_v4, %v292_v60  ;;  %v624_v6 = vadd.f32 %v623_v44, %v292_v60 }
 0x18e   :  { %v603_v7 = vpop.f32.mrf.mxu0  ;;  %v627_v8 = vpop.f32.mrf.mxu1 }
 0x18f   :  { %649 = vst [vmem:[#allocation5 + $0x58] sm:$0xff] %v600_v5  ;;  %673 = vst [vmem:[#allocation5 + $0x118] sm:$0xff] %v624_v6  ;;  %v604_v9 = vadd.f32 %v603_v7, %v288_v58  ;;  %v628_v10 = vadd.f32 %v627_v8, %v288_v58 }
 0x190   :  { %v605_v12 = vpop.f32.mrf.mxu0  ;;  %v629_v15 = vpop.f32.mrf.mxu1 }
 0x191   :  { %654 = vst [vmem:[#allocation5 + $0x80] sm:$0xff] %v604_v9  ;;  %678 = vst [vmem:[#allocation5 + $0x140] sm:$0xff] %v628_v10  ;;  %v606_v18 = vadd.f32 %v605_v12, %v292_v60  ;;  %v630_v19 = vadd.f32 %v629_v15, %v292_v60 }
 0x192   :  { %v609_v20 = vpop.f32.mrf.mxu0  ;;  %v633_v23 = vpop.f32.mrf.mxu1 }
 0x193   :  { %655 = vst [vmem:[#allocation5 + $0x88] sm:$0xff] %v606_v18  ;;  %679 = vst [vmem:[#allocation5 + $0x148] sm:$0xff] %v630_v19  ;;  %v610_v24 = vadd.f32 %v609_v20, %v288_v58  ;;  %v634_v25 = vadd.f32 %v633_v23, %v288_v58 }
 0x194   :  { %v611_v26 = vpop.f32.mrf.mxu0  ;;  %v635_v27 = vpop.f32.mrf.mxu1 }
 0x195   :  { %660 = vst [vmem:[#allocation5 + $0xb0] sm:$0xff] %v610_v24  ;;  %684 = vst [vmem:[#allocation5 + $0x170] sm:$0xff] %v634_v25  ;;  %v612_v28 = vadd.f32 %v611_v26, %v292_v60  ;;  %v636_v29 = vadd.f32 %v635_v27, %v292_v60 }
 0x197   :  { %661 = vst [vmem:[#allocation5 + $0xb8] sm:$0xff] %v612_v28  ;;  %685 = vst [vmem:[#allocation5 + $0x178] sm:$0xff] %v636_v29 }
 0x198   :  { %779 = shalt.err (!%p776_p9)
}
 0x199   :  { %697 = dma.vmem_to_hbm [thread:$0]  %s692_s18, 6144, %s1027_s5, [#allocation4], %s793_s21, %s793_s21, %s794_s22  }
 0x19a   :  { %790 = dma.done.wait [#allocation4], 6144  }
 0x19b   :  { %791 = vsyncadd [#allocation4], 4294961152 }
 0x19c   :  { %701 = vsyncpa [#allocation3], 1 }
 0x19d   :  { %702 = vsyncpa [#allocation4], 1 }

</bundles_post_ra>
